<compile_context>
chip_gen: v5e
topology: v5e:2x2
jax: 0.10.0
libtpu: 0.0.40
codegen_flags: <defaults>
</compile_context>

<pallas_src>
import jax
import jax.numpy as jnp
from jax.experimental import pallas as pl
from jax.experimental.pallas import tpu as pltpu

# Arrays smaller than this are passed straight through (identity is exact);
# kernel-launch overhead would dominate the copy below this size.
_PASSTHROUGH_BYTES = 512 * 1024


def _dma_identity_kernel(x_hbm_ref, o_hbm_ref, copy_sem):
    # Pure pass-through: one whole-array HBM -> HBM DMA.  Never touches VMEM,
    # vld/vst slots, or the BlockSpec pipeline.
    cp = pltpu.make_async_copy(x_hbm_ref, o_hbm_ref, copy_sem)
    cp.start()
    cp.wait()


def _dma_identity(x):
    """Single-DMA HBM->HBM copy of an arbitrary-shaped array."""
    return pl.pallas_call(
        _dma_identity_kernel,
        out_shape=jax.ShapeDtypeStruct(x.shape, x.dtype),
        in_specs=[pl.BlockSpec(memory_space=pl.ANY)],
        out_specs=pl.BlockSpec(memory_space=pl.ANY),
        scratch_shapes=[pltpu.SemaphoreType.DMA(())],
    )(x)


_dma_identity_jit = jax.jit(_dma_identity)


def _identity_one(x):
    """Identity for a single array of arbitrary shape/dtype."""
    nbytes = x.size * jnp.dtype(x.dtype).itemsize
    if x.size == 0 or nbytes < _PASSTHROUGH_BYTES:
        # True identity passthrough: same buffer, zero cost, always correct.
        return x
    return _dma_identity_jit(x)


def identity_forward(*inputs):
    """Matches torch Identity.forward(*input) -> returns the input tuple."""
    return tuple(_identity_one(x) for x in inputs)


if __name__ == "__main__":
    key = jax.random.PRNGKey(0)
    k1, k2, k3 = jax.random.split(key, 3)
    x = jax.random.normal(k1, (2, 4, 16, 16), dtype=jnp.float32)  # 8 KiB -> passthrough
    y = jax.random.normal(k2, (2, 8, 32), dtype=jnp.float32)      # 2 KiB -> passthrough
    z = jax.random.normal(k3, (1024, 2048), dtype=jnp.float32)    # 8 MiB -> single HBM->HBM DMA

    out = identity_forward(x, y, z)
    out = jax.block_until_ready(out)

    assert isinstance(out, tuple) and len(out) == 3
    for inp, res in zip((x, y, z), out):
        assert res.shape == inp.shape and res.dtype == inp.dtype
        assert bool(jnp.all(res == inp))
    print("KERNEL_OK")
</pallas_src>

<mosaic_0001>
module attributes {stable_mosaic.version = 11 : i64} {
  func.func @_dma_identity_kernel(%arg0: memref<1024x2048xf32, #tpu.memory_space<any>>, %arg1: memref<1024x2048xf32, #tpu.memory_space<any>>, %arg2: memref<!tpu.dma_semaphore, #tpu.memory_space<semaphore_mem>>) attributes {dimension_semantics = [], scalar_prefetch = 0 : i64, scratch_operands = 1 : i64, tpu.core_type = #tpu.core_type<tc>} {
    tpu.enqueue_dma source(%arg0 : memref<1024x2048xf32, #tpu.memory_space<any>>) target(%arg1 : memref<1024x2048xf32, #tpu.memory_space<any>>) target_semaphore(%arg2 : memref<!tpu.dma_semaphore, #tpu.memory_space<semaphore_mem>>)
    tpu.wait_dma2 semaphore(%arg2 : memref<!tpu.dma_semaphore, #tpu.memory_space<semaphore_mem>>) src(%arg0 : memref<1024x2048xf32, #tpu.memory_space<any>>) dst(%arg1 : memref<1024x2048xf32, #tpu.memory_space<any>>)
    return
  }
}

</mosaic_0001>

<bundles_post_ra>
// kernel: _dma_identity.1
= control target key start
LH: loop header
LB: loop body
LE: loop exit
PB: predicated region body
PF: predicated region fallthrough
CT: control target
= control target key end

     0   :  { %s33_s12 = smov [#allocation2]   ;;  %s34_s13 = smov [#allocation3]   ;;  %s52_s0 = inlined_call_operand.hbm [shape: f32[1024,2048], index: 0, kind: input, shape index: {}]   ;;  %s53_s1 = inlined_call_operand.hbm [shape: f32[1024,2048], index: 1, kind: output, shape index: {}]  }
   0x1   :  { %s10_s8 = sshll.u32 %s52_s0, 4  ;;  %s12_s11 = sshll.u32 %s53_s1, 4  ;;  %s11_s8 = int_to_ptr.hbm [resolvable:$true] %s10_s8  ;;  %s13_s11 = int_to_ptr.hbm [resolvable:$true] %s12_s11 }
   0x2   :  { %s35_s14 = smov 0  }
   0x3   :  { %16 = dma.general %s11_s8, 262144, %s13_s11, %s33_s12, %s34_s13, [#allocation4], %s35_s14, 0  }
   0x4   :  { %31 = dma.done.wait [#allocation2], 262144 }
   0x5   :  { %32 = vsyncadd [#allocation2], 4294705152 }
   0x6   :  { %21 = vsyncmov [#allocation2] }
   0x9   :  { %s22_s15 = vpop.sfrf %21 }
   0xa   :  { %p27_p0 = scmp.ne.s32.totalorder %s22_s15, 0 }
   0xc   :  { %26 = shalt.err (%p27_p0)  }

</bundles_post_ra>
